<compile_context>
chip_gen: v5e
topology: v5e:2x2
jax: 0.10.0
libtpu: 0.0.40
codegen_flags: <defaults>
</compile_context>

<pallas_src>
import functools

import jax
import jax.numpy as jnp
from jax.experimental import pallas as pl
from jax.experimental.pallas import tpu as pltpu


def _rmsnorm_kernel(x_ref, w_ref, o_ref, *, eps, inv_dim):
    # Upcast to float32 (matches x.float() in the PyTorch module).
    x = x_ref[...].astype(jnp.float32)                       # (tm, dim)
    # Hoist (1 + weight) once per grid step (broadcast is not CSE'd by JAX).
    w1 = 1.0 + w_ref[...].astype(jnp.float32)                # (1, dim)
    # Mean over the true hidden size (Mosaic masks any padded lanes in the
    # reduction, and boundary-row garbage only affects rows that are never
    # written back).
    ms = jnp.sum(x * x, axis=-1, keepdims=True) * inv_dim    # (tm, 1)
    inv = jax.lax.rsqrt(ms + eps)
    # Re-read + re-cast x so the full f32 tile need not stay live across both
    # the reduction and the epilogue (smaller VMEM footprint; the extra
    # vld + cast sits in slack slots of an HBM-bound kernel).
    o_ref[...] = ((x_ref[...].astype(jnp.float32) * inv) * w1).astype(o_ref.dtype)


def _round_up(x, m):
    return (x + m - 1) // m * m


def _chip_info():
    """Returns (vmem_capacity_bytes_per_core, is_two_tensorcore_chip)."""
    vmem_cap = None
    try:
        vmem_cap = int(pltpu.get_tpu_info().vmem_capacity_bytes)
    except Exception:
        vmem_cap = None
    kind = ""
    try:
        kind = jax.devices()[0].device_kind.lower()
    except Exception:
        kind = ""
    is_v7 = ("v7" in kind) or ("tpu7" in kind) or ("tpu 7" in kind)
    if vmem_cap is None:
        # Unknown hardware -> be conservative (safe on the 64 MiB/TC part).
        vmem_cap = 128 * 1024 * 1024 if (kind and not is_v7) else 64 * 1024 * 1024
    if is_v7:
        # v7x has 64 MiB per TensorCore even if the query reports per-chip.
        vmem_cap = min(vmem_cap, 64 * 1024 * 1024)
    return vmem_cap, is_v7


def gemma_rms_norm(x, weight, eps=1e-6, *, max_row_tile=1024):
    """x: (..., dim); weight: (dim,). Returns same shape/dtype as x."""
    orig_shape = x.shape
    dim = orig_shape[-1]
    assert weight.shape == (dim,)

    x2d = x.reshape(-1, dim)
    rows = x2d.shape[0]
    w2d = weight.reshape(1, dim)

    in_bytes = jnp.dtype(x.dtype).itemsize
    # Sublane-packing granule: f32 -> 8 rows, bf16 -> 16, int8/fp8 -> 32.
    granule = 8 * max(1, 4 // in_bytes)

    vmem_cap, two_tc = _chip_info()
    vmem_tile_budget = vmem_cap // 2          # 64 MiB on v5e/v6e, 32 MiB on v7x
    vmem_limit = (vmem_cap * 3) // 4          # 96 MiB on v5e/v6e, 48 MiB on v7x

    # Per-element VMEM per grid step: 2x double-buffered input + 2x
    # double-buffered output (input dtype) + ~1 live f32 tile.
    per_elem = 4 * in_bytes + 4
    tm = vmem_tile_budget // (dim * per_elem)
    tm = max(granule, min(max_row_tile, (tm // granule) * granule))

    rows_g = _round_up(rows, granule)
    if tm >= rows_g:
        if two_tc and rows_g >= 2 * granule:
            # Give each v7x TensorCore at least one row block to stream.
            tm = _round_up(pl.cdiv(rows, 2), granule)
        else:
            # Single-TC chip: one tile when it fits (no extra step overhead).
            tm = rows_g

    grid = (pl.cdiv(rows, tm),)

    cost = pl.CostEstimate(
        flops=int(3 * rows * dim),
        transcendentals=int(rows),
        bytes_accessed=int(2 * rows * dim * in_bytes + dim * 4),
    )

    out = pl.pallas_call(
        functools.partial(_rmsnorm_kernel, eps=eps, inv_dim=1.0 / dim),
        out_shape=jax.ShapeDtypeStruct((rows, dim), x.dtype),
        grid_spec=pltpu.PrefetchScalarGridSpec(
            num_scalar_prefetch=0,
            grid=grid,
            in_specs=[
                pl.BlockSpec((tm, dim), lambda i: (i, 0)),   # x row tile
                pl.BlockSpec((1, dim), lambda i: (0, 0)),    # weight, resident
            ],
            out_specs=pl.BlockSpec((tm, dim), lambda i: (i, 0)),
        ),
        compiler_params=pltpu.CompilerParams(
            dimension_semantics=("parallel",),
            vmem_limit_bytes=vmem_limit,
        ),
        cost_estimate=cost,
    )(x2d, w2d)

    return out.reshape(orig_shape)


def _reference(x, weight, eps=1e-6):
    xf = x.astype(jnp.float32)
    normed = xf * jax.lax.rsqrt(jnp.mean(xf * xf, axis=-1, keepdims=True) + eps)
    return (normed * (1.0 + weight.astype(jnp.float32))).astype(x.dtype)


if __name__ == "__main__":
    key = jax.random.PRNGKey(0)
    kx, kw = jax.random.split(key)

    batch, seq, hidden = 2, 8, 32
    # Gemma inputs are typically bf16; the module upcasts to f32 internally.
    x = jax.random.normal(kx, (batch, seq, hidden), dtype=jnp.float32).astype(jnp.bfloat16)
    # nn.Parameter(torch.zeros(dim)) -> deterministic small perturbation so the
    # (1 + weight) path is exercised (zeros would also be valid).
    weight = 0.1 * jax.random.normal(kw, (hidden,), dtype=jnp.float32)

    out = gemma_rms_norm(x, weight, eps=1e-6)
    out = jax.block_until_ready(out)

    ref = _reference(x, weight, eps=1e-6)
    assert out.shape == x.shape and out.dtype == x.dtype
    assert jnp.allclose(out.astype(jnp.float32), ref.astype(jnp.float32),
                        atol=1e-2, rtol=1e-2)

    print("KERNEL_OK")
</pallas_src>

<mosaic_0001>
module attributes {stable_mosaic.version = 11 : i64} {
  func.func @_rmsnorm_kernel(%arg0: i32, %arg1: memref<16x32xbf16, #tpu.memory_space<vmem>>, %arg2: memref<1x32xf32, #tpu.memory_space<vmem>>, %arg3: memref<16x32xbf16, #tpu.memory_space<vmem>>) attributes {dimension_semantics = [#tpu.dimension_semantics<parallel>], iteration_bounds = array<i64: 1>, scalar_prefetch = 0 : i64, scratch_operands = 0 : i64, tpu.core_type = #tpu.core_type<tc>, window_params = [{transform_indices = @transform_0, window_bounds = array<i64: 16, 32>}, {pipeline_mode = #tpu.pipeline_mode<synchronous>, transform_indices = @transform_1, window_bounds = array<i64: 1, 32>}, {transform_indices = @transform_2, window_bounds = array<i64: 16, 32>}]} {
    %c0 = arith.constant 0 : index
    %c0_0 = arith.constant 0 : index
    %0 = vector.load %arg1[%c0, %c0_0] : memref<16x32xbf16, #tpu.memory_space<vmem>>, vector<16x32xbf16>
    %1 = arith.extf %0 : vector<16x32xbf16> to vector<16x32xf32>
    %c0_1 = arith.constant 0 : index
    %c0_2 = arith.constant 0 : index
    %2 = vector.load %arg2[%c0_1, %c0_2] : memref<1x32xf32, #tpu.memory_space<vmem>>, vector<1x32xf32>
    %cst = arith.constant 1.000000e+00 : f32
    %3 = vector.broadcast %cst : f32 to vector<1x32xf32>
    %4 = arith.addf %3, %2 : vector<1x32xf32>
    %5 = arith.mulf %1, %1 : vector<16x32xf32>
    %cst_3 = arith.constant dense<0.000000e+00> : vector<16xf32>
    %6 = vector.multi_reduction <add>, %5, %cst_3 [1] : vector<16x32xf32> to vector<16xf32>
    %7 = vector.shape_cast %6 : vector<16xf32> to vector<16x1xf32>
    %cst_4 = arith.constant 3.125000e-02 : f32
    %8 = vector.broadcast %cst_4 : f32 to vector<16x1xf32>
    %9 = arith.mulf %7, %8 : vector<16x1xf32>
    %cst_5 = arith.constant 9.99999997E-7 : f32
    %10 = vector.broadcast %cst_5 : f32 to vector<16x1xf32>
    %11 = arith.addf %9, %10 : vector<16x1xf32>
    %12 = math.rsqrt %11 : vector<16x1xf32>
    %c0_6 = arith.constant 0 : index
    %c0_7 = arith.constant 0 : index
    %13 = vector.load %arg1[%c0_6, %c0_7] : memref<16x32xbf16, #tpu.memory_space<vmem>>, vector<16x32xbf16>
    %14 = arith.extf %13 : vector<16x32xbf16> to vector<16x32xf32>
    %15 = vector.broadcast %12 : vector<16x1xf32> to vector<16x32xf32>
    %16 = arith.mulf %14, %15 : vector<16x32xf32>
    %17 = vector.broadcast %4 : vector<1x32xf32> to vector<16x32xf32>
    %18 = arith.mulf %16, %17 : vector<16x32xf32>
    %19 = arith.truncf %18 : vector<16x32xf32> to vector<16x32xbf16>
    %c0_8 = arith.constant 0 : index
    %c0_9 = arith.constant 0 : index
    %20 = vector.load %arg3[%c0_8, %c0_9] : memref<16x32xbf16, #tpu.memory_space<vmem>>, vector<16x32xbf16>
    tpu.vector_store %arg3[%c0_8, %c0_9], %19 {strides = array<i32>} : memref<16x32xbf16, #tpu.memory_space<vmem>>, vector<16x32xbf16>,
    return
  }
  func.func @transform_0(%arg0: i32) -> (i32, i32) {
    %c0_i32 = arith.constant 0 : i32
    %c0_i32_0 = arith.constant 0 : i32
    return %arg0, %c0_i32 : i32, i32
  }
  func.func @transform_1(%arg0: i32) -> (i32, i32) {
    %c0_i32 = arith.constant 0 : i32
    %c0_i32_0 = arith.constant 0 : i32
    %c0_i32_1 = arith.constant 0 : i32
    return %c0_i32, %c0_i32_0 : i32, i32
  }
  func.func @transform_2(%arg0: i32) -> (i32, i32) {
    %c0_i32 = arith.constant 0 : i32
    %c0_i32_0 = arith.constant 0 : i32
    return %arg0, %c0_i32 : i32, i32
  }
}

</mosaic_0001>

<bundles_post_ra>
// kernel: tpu_custom_call.1
= control target key start
LH: loop header
LB: loop body
LE: loop exit
PB: predicated region body
PF: predicated region fallthrough
CT: control target
= control target key end

     0   :  { %7 = vsyncpa [#allocation3], 0  ;;  %s239_s0 = inlined_call_operand.hbm [shape: bf16[16,32], index: 0, kind: input, shape index: {}]   ;;  %s240_s1 = inlined_call_operand.hbm [shape: f32[1,32], index: 1, kind: input, shape index: {}]   ;;  %s241_s2 = inlined_call_operand.hbm [shape: bf16[16,32], index: 2, kind: output, shape index: {}]  }
   0x1   :  { %8 = vsyncpa [#allocation6], 0 }
   0x2   :  { %9 = vsyncpa [#allocation4], 0  ;;  %s14_s11 = sshll.u32 %s239_s0, 4  ;;  %s204_s12 = smov [#allocation2]   ;;  %s15_s11 = int_to_ptr.hbm [resolvable:$true] %s14_s11 }
   0x3   :  { %s16_s13 = sshll.u32 %s204_s12, 4  ;;  %s28_s16 = sshll.u32 %s240_s1, 4  ;;  %s17_s13 = int_to_ptr.vmem [resolvable:$true] %s16_s13  ;;  %s29_s16 = int_to_ptr.hbm [resolvable:$true] %s28_s16 }
   0x4   :  { %s205_s17 = smov 64   ;;  %s206_s18 = smov 4  }
   0x5   :  { %22 = dma.hbm_to_vmem [thread:$0]  %s15_s11, 128, %s17_s13, [#allocation3], %s205_s17, %s205_s17, %s206_s18  }
   0x6   :  { %s207_s19 = smov [#allocation5]  }
   0x7   :  { %s30_s20 = sshll.u32 %s207_s19, 4  ;;  %s31_s20 = int_to_ptr.vmem [resolvable:$true] %s30_s20 }
   0x8   :  { %33 = dma.hbm_to_vmem [thread:$0]  %s29_s16, 16, %s31_s20, [#allocation6]  }
   0x9   :  { %198 = dma.done.wait [#allocation3], 128  }
   0xa   :  { %199 = vsyncadd [#allocation3], 4294967168 }
   0xb   :  { %200 = dma.done.wait [#allocation6], 16  }
   0xc   :  { %201 = vsyncadd [#allocation6], 4294967280  ;;  %v114_v0 = vld [vmem:[#allocation2] sm:$0xff]   ;;  %vm50_vm0 = vcmask 261120   ;;  %v46_v16 = vld [vmem:[#allocation5] sm:$0x1] }
   0xd   :  { %v115_v1 = vunpack.c.l.bf16 %v114_v0  ;;  %v116_v3 = vunpack.c.h.bf16 %v114_v0  ;;  %v47_v18 = vadd.f32 1.0, %v46_v16  ;;  %vm90_vm5 = vcmask 257024   ;;  %s208_s0 = smov [#allocation7]   ;;  %s99_s23 = sshll.u32 %s241_s2, 4  ;;  %s100_s23 = int_to_ptr.hbm [resolvable:$true] %s99_s23 }
   0xe   :  { %s97_s1 = sshll.u32 %s208_s0, 4  ;;  %s98_s1 = int_to_ptr.vmem [resolvable:$true] %s97_s1 }
   0xf   :  { %v48_v2 = vmul.f32 %v115_v1, %v115_v1  ;;  %v49_v5 = vmul.f32 %v116_v3, %v116_v3  ;;  %v84_v23 = vperm.slane %v47_v18, 0 }
  0x11   :  { %v51_v4 = vsel %vm50_vm0, %v48_v2, 0.0  ;;  %v54_v6 = vsel %vm50_vm0, %v49_v5, 0.0 }
  0x12   :  { %52 = vadd.xlane.f32.xlu0 %v51_v4 }
  0x1a   :  { %55 = vadd.xlane.f32.xlu0 %v54_v6 }
  0x85   :  { %v53_v7 = vpop.xlane.xlu0 %52 }
  0x86   :  { %v57_v8 = vmul.f32 0.03125, %v53_v7 }
  0x88   :  { %v59_v9 = vadd.f32 1e-06, %v57_v8 }
  0x8a   :  { %122 = vrsqrt.f32 %v59_v9  ;;  %vm67_vm2 = vweird.f32 %v59_v9 }
  0x8d   :  { %v56_v10 = vpop.xlane.xlu0 %55 }
  0x8e   :  { %v58_v11 = vmul.f32 0.03125, %v56_v10 }
  0x90   :  { %v123_v12 = vpop.eup %122  ;;  %v60_v13 = vadd.f32 1e-06, %v58_v11 }
  0x91   :  { %v62_v14 = vmul.f32 %v123_v12, %v59_v9  ;;  %vm68_vm1 = vweird.f32 %v123_v12 }
  0x92   :  { %124 = vrsqrt.f32 %v60_v13  ;;  %vm69_vm3 = vmor %vm67_vm2, %vm68_vm1  ;;  %vm77_vm6 = vweird.f32 %v60_v13 }
  0x93   :  { %v63_v15 = vmul.f32 %v123_v12, %v62_v14 }
  0x95   :  { %v64_v17 = vmul.f32 0.5, %v63_v15 }
  0x97   :  { %v65_v19 = vsub.f32 1.5, %v64_v17 }
  0x98   :  { %v125_v20 = vpop.eup %124 }
  0x99   :  { %v66_v21 = vmul.f32 %v123_v12, %v65_v19  ;;  %v72_v22 = vmul.f32 %v125_v20, %v60_v13  ;;  %vm78_vm4 = vweird.f32 %v125_v20 }
  0x9a   :  { %vm79_vm7 = vmor %vm77_vm6, %vm78_vm4 }
  0x9b   :  { %v70_v24 = vsel %vm69_vm3, %v123_v12, %v66_v21  ;;  %v73_v25 = vmul.f32 %v125_v20, %v72_v22 }
  0x9c   :  { %v81_v26 = vmul.f32 %v115_v1, %v70_v24 }
  0x9d   :  { %v74_v27 = vmul.f32 0.5, %v73_v25 }
  0x9e   :  { %v86_v28 = vmul.f32 %v84_v23, %v81_v26 }
  0x9f   :  { %v75_v29 = vsub.f32 1.5, %v74_v27 }
  0xa0   :  { %v88_v30 = vpack.c.bf16 %v86_v28, %v86_v28 }
  0xa1   :  { %v76_v31 = vmul.f32 %v125_v20, %v75_v29 }
  0xa2   :  { %91 = vst.msk [vmem:[#allocation7] sm:$0xf] %vm90_vm5, %v88_v30 }
  0xa3   :  { %v80_v32 = vsel %vm79_vm7, %v125_v20, %v76_v31 }
  0xa4   :  { %v82_v33 = vmul.f32 %v116_v3, %v80_v32 }
  0xa6   :  { %v87_v34 = vmul.f32 %v84_v23, %v82_v33 }
  0xa8   :  { %v89_v35 = vpack.c.bf16 %v87_v34, %v87_v34 }
  0xaa   :  { %92 = vst.msk [vmem:[#allocation7 + $0x4] sm:$0xf] %vm90_vm5, %v89_v35 }
  0xab   :  { %105 = dma.vmem_to_hbm [thread:$0]  %s98_s1, 128, %s100_s23, [#allocation4], %s205_s17, %s205_s17, %s206_s18  }
  0xac   :  { %202 = dma.done.wait [#allocation4], 128  }
  0xad   :  { %203 = vsyncadd [#allocation4], 4294967168 }
  0xae   :  { %110 = vsyncpa [#allocation3], 1 }
  0xaf   :  { %111 = vsyncpa [#allocation6], 1 }
  0xb0   :  { %112 = vsyncpa [#allocation4], 1 }

</bundles_post_ra>
